<compile_context>
chip_gen: v7x
topology: tpu7x:2x2x1
jax: 0.10.0
libtpu: 0.0.40
codegen_flags: <defaults>
</compile_context>

<pallas_src>
import functools

import jax
import jax.numpy as jnp
from jax.experimental import pallas as pl
from jax.experimental.pallas import tpu as pltpu


def _round_up(x, m):
    return (x + m - 1) // m * m


def fb_text_kernel(len_ref, vecs_ref, table_ref, table_nz_ref, w_ref, b_ref,
                   out_ref, *, t_real, e_real):
    # len_ref:      (1, TB)  int32   valid sequence length per batch column
    # vecs_ref:     (Tp, TB) int32   token ids; time on sublanes, batch on lanes
    # table_ref:    (Ep, Vp) bf16    embedding table, transposed + padded
    # table_nz_ref: (Ep, Vp) bf16    (table != 0) mask (taken from the f32 table)
    # w_ref:        (2, Ep)  f32     head weight
    # b_ref:        (2, 1)   f32     head bias
    # out_ref:      (2, TB)  f32     logits, batch on lanes
    Tp, TB = vecs_ref.shape
    Ep, Vp = table_ref.shape

    lens = len_ref[...]                                            # (1, TB)
    idx = vecs_ref[...]                                            # (Tp, TB)

    # valid[t, b] = t < len[b]; invalid slots get id -1 (matches no vocab row).
    t_iota = jax.lax.broadcasted_iota(jnp.int32, (Tp, 1), 0)       # (Tp, 1)
    masked_idx = jnp.where(t_iota < lens, idx, -1)                 # (Tp, TB)

    # Per-batch vocab counts, folded over time BEFORE the gather matmul:
    #   cnt[v, b] = #{ t < len[b] : idx[t, b] == v }
    v_iota = jax.lax.broadcasted_iota(jnp.int32, (Vp, 1), 0)       # (Vp, 1)
    cnt = jnp.zeros((Vp, TB), jnp.float32)
    for t in range(t_real):                                        # small, unrolled
        cnt = cnt + (v_iota == masked_idx[t:t + 1, :]).astype(jnp.float32)
    cnt_bf = cnt.astype(jnp.bfloat16)        # integer counts <= T: exact in bf16

    # num[e, b] = sum_t valid * table[idx, e]        (cnt-folded gather, bf16 MXU)
    # den[e, b] = sum_t valid * (table[idx, e] != 0)
    num = jnp.dot(table_ref[...], cnt_bf, preferred_element_type=jnp.float32)
    den = jnp.dot(table_nz_ref[...], cnt_bf, preferred_element_type=jnp.float32)

    # Guard only padded feature rows (they are exactly 0/0); real rows keep
    # 0/0 -> NaN parity with PyTorch.
    feat_real = jax.lax.broadcasted_iota(jnp.int32, (Ep, 1), 0) < e_real
    den_safe = jnp.where(feat_real, den, 1.0)
    avg = num * pl.reciprocal(den_safe, approx=True)               # (Ep, TB)

    # hidden_to_popularity: (2, Ep) @ (Ep, TB) + b -> lane-dense (2, TB) store.
    out_ref[...] = (
        jnp.dot(w_ref[...], avg, preferred_element_type=jnp.float32) + b_ref[...]
    )


def fb_text_forward(vecs, input_len, emb_weight, lin_w, lin_b):
    """vecs: (B, T) int; input_len: (B,) int; emb_weight: (V, E) f32;
    lin_w: (2, E) f32; lin_b: (2,) f32. Returns (B, 2) f32."""
    B, T = vecs.shape
    V, E = emb_weight.shape

    # Lane-dense padded shapes: batch lives on the 128-lane axis everywhere.
    Ep = _round_up(E, 128)                 # 100 -> 128 features
    Vp = _round_up(V, 128)                 # vocab extent for the count gather
    Tp = _round_up(T, 8)                   # sublane-aligned time axis
    Bp = _round_up(B, 128)
    TB = 256 if Bp >= 512 else 128         # big tiles; >=2 grid steps once Bp>=256
    Bp = _round_up(Bp, TB)

    emb_f32 = emb_weight.astype(jnp.float32)
    # Feature-major (transposed) table, bf16 for the MXU; the nonzero mask is
    # taken from the f32 table so the (x != 0) semantics are exact.
    table_t = (jnp.zeros((Ep, Vp), jnp.float32)
               .at[:E, :V].set(emb_f32.T)).astype(jnp.bfloat16)
    table_nz_t = (jnp.zeros((Ep, Vp), jnp.float32)
                  .at[:E, :V].set((emb_f32 != 0).astype(jnp.float32).T)
                  ).astype(jnp.bfloat16)
    w = jnp.zeros((2, Ep), jnp.float32).at[:, :E].set(lin_w.astype(jnp.float32))
    b = lin_b.reshape(2, 1).astype(jnp.float32)

    # Token ids / lengths transposed so each input tile is one dense (8,128) DMA.
    vecs_t = jnp.zeros((Tp, Bp), jnp.int32).at[:T, :B].set(
        vecs.astype(jnp.int32).T)
    lens_t = jnp.ones((1, Bp), jnp.int32).at[0, :B].set(
        input_len.astype(jnp.int32))

    cost = pl.CostEstimate(
        flops=2 * 2 * Vp * Ep * Bp + 2 * 2 * Ep * Bp + Bp * T * Vp,
        transcendentals=Ep * Bp,
        bytes_accessed=(4 * (Tp * Bp + Bp) + 2 * 2 * Vp * Ep
                        + 4 * (2 * Ep + 2 + 2 * Bp)),
    )

    out_t = pl.pallas_call(
        functools.partial(fb_text_kernel, t_real=T, e_real=E),
        out_shape=jax.ShapeDtypeStruct((2, Bp), jnp.float32),
        grid_spec=pltpu.PrefetchScalarGridSpec(
            num_scalar_prefetch=0,
            grid=(Bp // TB,),
            in_specs=[
                pl.BlockSpec((1, TB), lambda i: (0, i)),      # lengths
                pl.BlockSpec((Tp, TB), lambda i: (0, i)),     # token ids
                pl.BlockSpec((Ep, Vp), lambda i: (0, 0)),     # embedding table^T
                pl.BlockSpec((Ep, Vp), lambda i: (0, 0)),     # nonzero mask^T
                pl.BlockSpec((2, Ep), lambda i: (0, 0)),      # head weight
                pl.BlockSpec((2, 1), lambda i: (0, 0)),       # head bias
            ],
            out_specs=pl.BlockSpec((2, TB), lambda i: (0, i)),
        ),
        compiler_params=pltpu.CompilerParams(
            dimension_semantics=("parallel",),
            vmem_limit_bytes=8 * 1024 * 1024,
        ),
        cost_estimate=cost,
    )(lens_t, vecs_t, table_t, table_nz_t, w, b)
    return out_t[:, :B].T


def _reference(vecs, input_len, emb_weight, lin_w, lin_b):
    # Pure-JAX mirror of the PyTorch forward (for a sanity check).
    B, T = vecs.shape
    emb = jnp.take(emb_weight, vecs.astype(jnp.int32), axis=0)        # (B, T, E)
    valid = (jnp.arange(T)[None, :] < input_len[:, None]).astype(jnp.float32)
    x = emb * valid[:, :, None]
    mask = (x != 0).astype(jnp.float32)
    avg = (x * mask).sum(axis=1) / mask.sum(axis=1)
    return avg @ lin_w.T + lin_b


if __name__ == "__main__":
    # Small deterministic setup consistent with the module:
    # vocab=64, embed dim E=100 (Linear(100, 2) hardcoded), batch B=2, T=8.
    V, E = 64, 100
    B, T = 2, 8

    key = jax.random.PRNGKey(0)
    k_emb, k_w, k_b, k_idx = jax.random.split(key, 4)

    emb_weight = jax.random.normal(k_emb, (V, E), dtype=jnp.float32)
    lin_w = jax.random.normal(k_w, (2, E), dtype=jnp.float32) * 0.1
    lin_b = jax.random.normal(k_b, (2,), dtype=jnp.float32) * 0.1

    vecs = jax.random.randint(k_idx, (B, T), 0, V, dtype=jnp.int32)
    # pack_padded_sequence (enforce_sorted=True) expects descending lengths.
    input_len = jnp.array([T, T - 3], dtype=jnp.int32)

    out = fb_text_forward(vecs, input_len, emb_weight, lin_w, lin_b)
    out = jax.block_until_ready(out)

    ref = _reference(vecs, input_len, emb_weight, lin_w, lin_b)
    assert out.shape == (B, 2) and out.dtype == jnp.float32
    assert bool(jnp.allclose(out, ref, rtol=1e-2, atol=1e-2)), (out, ref)
    print("KERNEL_OK")
</pallas_src>

<mosaic_0001>
module attributes {stable_mosaic.version = 11 : i64} {
  func.func @fb_text_kernel(%arg0: i32, %arg1: memref<1x128xi32, #tpu.memory_space<vmem>>, %arg2: memref<8x128xi32, #tpu.memory_space<vmem>>, %arg3: memref<128x128xbf16, #tpu.memory_space<vmem>>, %arg4: memref<128x128xbf16, #tpu.memory_space<vmem>>, %arg5: memref<2x128xf32, #tpu.memory_space<vmem>>, %arg6: memref<2x1xf32, #tpu.memory_space<vmem>>, %arg7: memref<2x128xf32, #tpu.memory_space<vmem>>) attributes {dimension_semantics = [#tpu.dimension_semantics<parallel>], iteration_bounds = array<i64: 1>, scalar_prefetch = 0 : i64, scratch_operands = 0 : i64, tpu.core_type = #tpu.core_type<tc>, window_params = [{transform_indices = @transform_0, window_bounds = array<i64: 1, 128>}, {transform_indices = @transform_1, window_bounds = array<i64: 8, 128>}, {pipeline_mode = #tpu.pipeline_mode<synchronous>, transform_indices = @transform_2, window_bounds = array<i64: 128, 128>}, {pipeline_mode = #tpu.pipeline_mode<synchronous>, transform_indices = @transform_3, window_bounds = array<i64: 128, 128>}, {pipeline_mode = #tpu.pipeline_mode<synchronous>, transform_indices = @transform_4, window_bounds = array<i64: 2, 128>}, {pipeline_mode = #tpu.pipeline_mode<synchronous>, transform_indices = @transform_5, window_bounds = array<i64: 2, 1>}, {transform_indices = @transform_6, window_bounds = array<i64: 2, 128>}]} {
    %c0 = arith.constant 0 : index
    %c0_0 = arith.constant 0 : index
    %0 = vector.load %arg1[%c0, %c0_0] : memref<1x128xi32, #tpu.memory_space<vmem>>, vector<1x128xi32>
    %c0_1 = arith.constant 0 : index
    %c0_2 = arith.constant 0 : index
    %1 = vector.load %arg2[%c0_1, %c0_2] : memref<8x128xi32, #tpu.memory_space<vmem>>, vector<8x128xi32>
    %2 = tpu.iota {dimensions = array<i32: 0>} : vector<8x1xi32>
    %3 = vector.broadcast %2 : vector<8x1xi32> to vector<8x128xi32>
    %4 = vector.broadcast %0 : vector<1x128xi32> to vector<8x128xi32>
    %5 = arith.cmpi slt, %3, %4 : vector<8x128xi32>
    %c-1_i32 = arith.constant -1 : i32
    %6 = vector.broadcast %c-1_i32 : i32 to vector<8x128xi32>
    %7 = arith.select %5, %1, %6 : vector<8x128xi1>, vector<8x128xi32>
    %8 = tpu.iota {dimensions = array<i32: 0>} : vector<128x1xi32>
    %cst = arith.constant 0.000000e+00 : f32
    %9 = vector.broadcast %cst : f32 to vector<128x128xf32>
    %10 = vector.extract_strided_slice %7 {offsets = [0, 0], sizes = [1, 128], strides = [1, 1]} : vector<8x128xi32> to vector<1x128xi32>
    %11 = vector.broadcast %8 : vector<128x1xi32> to vector<128x128xi32>
    %12 = vector.broadcast %10 : vector<1x128xi32> to vector<128x128xi32>
    %13 = arith.cmpi eq, %11, %12 : vector<128x128xi32>
    %14 = arith.extui %13 : vector<128x128xi1> to vector<128x128xi32>
    %15 = arith.sitofp %14 : vector<128x128xi32> to vector<128x128xf32>
    %16 = arith.addf %9, %15 : vector<128x128xf32>
    %17 = vector.extract_strided_slice %7 {offsets = [1, 0], sizes = [1, 128], strides = [1, 1]} : vector<8x128xi32> to vector<1x128xi32>
    %18 = vector.broadcast %8 : vector<128x1xi32> to vector<128x128xi32>
    %19 = vector.broadcast %17 : vector<1x128xi32> to vector<128x128xi32>
    %20 = arith.cmpi eq, %18, %19 : vector<128x128xi32>
    %21 = arith.extui %20 : vector<128x128xi1> to vector<128x128xi32>
    %22 = arith.sitofp %21 : vector<128x128xi32> to vector<128x128xf32>
    %23 = arith.addf %16, %22 : vector<128x128xf32>
    %24 = vector.extract_strided_slice %7 {offsets = [2, 0], sizes = [1, 128], strides = [1, 1]} : vector<8x128xi32> to vector<1x128xi32>
    %25 = vector.broadcast %8 : vector<128x1xi32> to vector<128x128xi32>
    %26 = vector.broadcast %24 : vector<1x128xi32> to vector<128x128xi32>
    %27 = arith.cmpi eq, %25, %26 : vector<128x128xi32>
    %28 = arith.extui %27 : vector<128x128xi1> to vector<128x128xi32>
    %29 = arith.sitofp %28 : vector<128x128xi32> to vector<128x128xf32>
    %30 = arith.addf %23, %29 : vector<128x128xf32>
    %31 = vector.extract_strided_slice %7 {offsets = [3, 0], sizes = [1, 128], strides = [1, 1]} : vector<8x128xi32> to vector<1x128xi32>
    %32 = vector.broadcast %8 : vector<128x1xi32> to vector<128x128xi32>
    %33 = vector.broadcast %31 : vector<1x128xi32> to vector<128x128xi32>
    %34 = arith.cmpi eq, %32, %33 : vector<128x128xi32>
    %35 = arith.extui %34 : vector<128x128xi1> to vector<128x128xi32>
    %36 = arith.sitofp %35 : vector<128x128xi32> to vector<128x128xf32>
    %37 = arith.addf %30, %36 : vector<128x128xf32>
    %38 = vector.extract_strided_slice %7 {offsets = [4, 0], sizes = [1, 128], strides = [1, 1]} : vector<8x128xi32> to vector<1x128xi32>
    %39 = vector.broadcast %8 : vector<128x1xi32> to vector<128x128xi32>
    %40 = vector.broadcast %38 : vector<1x128xi32> to vector<128x128xi32>
    %41 = arith.cmpi eq, %39, %40 : vector<128x128xi32>
    %42 = arith.extui %41 : vector<128x128xi1> to vector<128x128xi32>
    %43 = arith.sitofp %42 : vector<128x128xi32> to vector<128x128xf32>
    %44 = arith.addf %37, %43 : vector<128x128xf32>
    %45 = vector.extract_strided_slice %7 {offsets = [5, 0], sizes = [1, 128], strides = [1, 1]} : vector<8x128xi32> to vector<1x128xi32>
    %46 = vector.broadcast %8 : vector<128x1xi32> to vector<128x128xi32>
    %47 = vector.broadcast %45 : vector<1x128xi32> to vector<128x128xi32>
    %48 = arith.cmpi eq, %46, %47 : vector<128x128xi32>
    %49 = arith.extui %48 : vector<128x128xi1> to vector<128x128xi32>
    %50 = arith.sitofp %49 : vector<128x128xi32> to vector<128x128xf32>
    %51 = arith.addf %44, %50 : vector<128x128xf32>
    %52 = vector.extract_strided_slice %7 {offsets = [6, 0], sizes = [1, 128], strides = [1, 1]} : vector<8x128xi32> to vector<1x128xi32>
    %53 = vector.broadcast %8 : vector<128x1xi32> to vector<128x128xi32>
    %54 = vector.broadcast %52 : vector<1x128xi32> to vector<128x128xi32>
    %55 = arith.cmpi eq, %53, %54 : vector<128x128xi32>
    %56 = arith.extui %55 : vector<128x128xi1> to vector<128x128xi32>
    %57 = arith.sitofp %56 : vector<128x128xi32> to vector<128x128xf32>
    %58 = arith.addf %51, %57 : vector<128x128xf32>
    %59 = vector.extract_strided_slice %7 {offsets = [7, 0], sizes = [1, 128], strides = [1, 1]} : vector<8x128xi32> to vector<1x128xi32>
    %60 = vector.broadcast %8 : vector<128x1xi32> to vector<128x128xi32>
    %61 = vector.broadcast %59 : vector<1x128xi32> to vector<128x128xi32>
    %62 = arith.cmpi eq, %60, %61 : vector<128x128xi32>
    %63 = arith.extui %62 : vector<128x128xi1> to vector<128x128xi32>
    %64 = arith.sitofp %63 : vector<128x128xi32> to vector<128x128xf32>
    %65 = arith.addf %58, %64 : vector<128x128xf32>
    %66 = arith.truncf %65 : vector<128x128xf32> to vector<128x128xbf16>
    %c0_3 = arith.constant 0 : index
    %c0_4 = arith.constant 0 : index
    %67 = vector.load %arg3[%c0_3, %c0_4] : memref<128x128xbf16, #tpu.memory_space<vmem>>, vector<128x128xbf16>
    %cst_5 = arith.constant dense<0.000000e+00> : vector<128x128xf32>
    %68 = tpu.matmul %67, %66, %cst_5 {dimension_numbers = #tpu.dot_dimension_numbers<[1], [0], [0], [1], [0, 0, 1, 1], [], []>} : vector<128x128xbf16>, vector<128x128xbf16>, vector<128x128xf32> -> vector<128x128xf32>
    %c0_6 = arith.constant 0 : index
    %c0_7 = arith.constant 0 : index
    %69 = vector.load %arg4[%c0_6, %c0_7] : memref<128x128xbf16, #tpu.memory_space<vmem>>, vector<128x128xbf16>
    %cst_8 = arith.constant dense<0.000000e+00> : vector<128x128xf32>
    %70 = tpu.matmul %69, %66, %cst_8 {dimension_numbers = #tpu.dot_dimension_numbers<[1], [0], [0], [1], [0, 0, 1, 1], [], []>} : vector<128x128xbf16>, vector<128x128xbf16>, vector<128x128xf32> -> vector<128x128xf32>
    %71 = tpu.iota {dimensions = array<i32: 0>} : vector<128x1xi32>
    %c100_i32 = arith.constant 100 : i32
    %72 = vector.broadcast %c100_i32 : i32 to vector<128x1xi32>
    %73 = arith.cmpi slt, %71, %72 : vector<128x1xi32>
    %cst_9 = arith.constant 1.000000e+00 : f32
    %74 = vector.shape_cast %73 : vector<128x1xi1> to vector<128x1xi1>
    %75 = vector.broadcast %74 : vector<128x1xi1> to vector<128x128xi1>
    %76 = vector.broadcast %cst_9 : f32 to vector<128x128xf32>
    %77 = arith.select %75, %70, %76 : vector<128x128xi1>, vector<128x128xf32>
    %78 = tpu.reciprocal %77 {approx = true} : vector<128x128xf32> -> vector<128x128xf32>
    %79 = arith.mulf %68, %78 : vector<128x128xf32>
    %c0_10 = arith.constant 0 : index
    %c0_11 = arith.constant 0 : index
    %80 = vector.load %arg5[%c0_10, %c0_11] : memref<2x128xf32, #tpu.memory_space<vmem>>, vector<2x128xf32>
    %cst_12 = arith.constant dense<0.000000e+00> : vector<2x128xf32>
    %81 = tpu.matmul %80, %79, %cst_12 {dimension_numbers = #tpu.dot_dimension_numbers<[1], [0], [0], [1], [0, 0, 1, 1], [], []>} : vector<2x128xf32>, vector<128x128xf32>, vector<2x128xf32> -> vector<2x128xf32>
    %c0_13 = arith.constant 0 : index
    %c0_14 = arith.constant 0 : index
    %82 = vector.load %arg6[%c0_13, %c0_14] : memref<2x1xf32, #tpu.memory_space<vmem>>, vector<2x1xf32>
    %83 = vector.broadcast %82 : vector<2x1xf32> to vector<2x128xf32>
    %84 = arith.addf %81, %83 : vector<2x128xf32>
    %c0_15 = arith.constant 0 : index
    %c0_16 = arith.constant 0 : index
    %85 = vector.load %arg7[%c0_15, %c0_16] : memref<2x128xf32, #tpu.memory_space<vmem>>, vector<2x128xf32>
    tpu.vector_store %arg7[%c0_15, %c0_16], %84 {strides = array<i32>} : memref<2x128xf32, #tpu.memory_space<vmem>>, vector<2x128xf32>,
    return
  }
  func.func @transform_0(%arg0: i32) -> (i32, i32) {
    %c0_i32 = arith.constant 0 : i32
    %c0_i32_0 = arith.constant 0 : i32
    return %c0_i32, %arg0 : i32, i32
  }
  func.func @transform_1(%arg0: i32) -> (i32, i32) {
    %c0_i32 = arith.constant 0 : i32
    %c0_i32_0 = arith.constant 0 : i32
    return %c0_i32, %arg0 : i32, i32
  }
  func.func @transform_2(%arg0: i32) -> (i32, i32) {
    %c0_i32 = arith.constant 0 : i32
    %c0_i32_0 = arith.constant 0 : i32
    %c0_i32_1 = arith.constant 0 : i32
    return %c0_i32, %c0_i32_0 : i32, i32
  }
  func.func @transform_3(%arg0: i32) -> (i32, i32) {
    %c0_i32 = arith.constant 0 : i32
    %c0_i32_0 = arith.constant 0 : i32
    %c0_i32_1 = arith.constant 0 : i32
    return %c0_i32, %c0_i32_0 : i32, i32
  }
  func.func @transform_4(%arg0: i32) -> (i32, i32) {
    %c0_i32 = arith.constant 0 : i32
    %c0_i32_0 = arith.constant 0 : i32
    %c0_i32_1 = arith.constant 0 : i32
    return %c0_i32, %c0_i32_0 : i32, i32
  }
  func.func @transform_5(%arg0: i32) -> (i32, i32) {
    %c0_i32 = arith.constant 0 : i32
    %c0_i32_0 = arith.constant 0 : i32
    %c0_i32_1 = arith.constant 0 : i32
    return %c0_i32, %c0_i32_0 : i32, i32
  }
  func.func @transform_6(%arg0: i32) -> (i32, i32) {
    %c0_i32 = arith.constant 0 : i32
    %c0_i32_0 = arith.constant 0 : i32
    return %c0_i32, %arg0 : i32, i32
  }
}

</mosaic_0001>

<bundles_post_ra>
// kernel: tpu_custom_call.1
= control target key start
LH: loop header
LB: loop body
LE: loop exit
PB: predicated region body
PF: predicated region fallthrough
CT: control target
= control target key end

     0   :  { %11 = vsyncpa [#allocation3], 0  ;;  %s2171_s0 = inlined_call_operand.vmem [shape: s32[1,128], index: 0, kind: input, shape index: {}]   ;;  %s2172_s1 = inlined_call_operand.hbm [shape: s32[8,128], index: 1, kind: input, shape index: {}]   ;;  %s2173_s2 = inlined_call_operand.hbm [shape: bf16[128,128], index: 2, kind: input, shape index: {}]   ;;  %s2174_s3 = inlined_call_operand.hbm [shape: bf16[128,128], index: 3, kind: input, shape index: {}]   ;;  %s2175_s4 = inlined_call_operand.vmem [shape: f32[2,128], index: 4, kind: input, shape index: {}]   ;;  %s2176_s5 = inlined_call_operand.vmem [shape: f32[2,1], index: 5, kind: input, shape index: {}]   ;;  %s2177_s6 = inlined_call_operand.hbm [shape: f32[2,128], index: 6, kind: output, shape index: {}]  }
   0x1   :  { %12 = vsyncpa [#allocation6], 0 }
   0x2   :  { %13 = vsyncpa [#allocation4], 0  ;;  %s1617_s21 = smov [#allocation5]   ;;  %s1523_s25 = scalar_lea.hbm %s2173_s2, 1024 }
   0x3   :  { %s31_s22 = sshll.u32 %s1617_s21, 4  ;;  %p1524_p0 = scmp.ne.s32.totalorder %s2173_s2, %s1523_s25  ;;  %s32_s22 = int_to_ptr.vmem [resolvable:$true] %s31_s22 }
   0x4   :  { %p1527_p1 = scmp.lt.u32.totalorder %s1523_s25, %s2173_s2 }
   0x6   :  { %p1529_p2 = pnand %p1527_p1, %p1524_p0 }
   0x8   :  { %1532 = shalt.err (!%p1529_p2)
}
   0x9   :  { %s1533_s30 = scalar_lea.vmem %s32_s22, 1024  ;;  %p1538_p4 = scmp.lt.s32.totalorder %s32_s22, %s32_s22 }
   0xa   :  { %p1534_p3 = scmp.ne.s32.totalorder %s32_s22, %s1533_s30  ;;  %p1539_p5 = scmp.lt.s32.totalorder %s1533_s30, %s1533_s30 }
   0xc   :  { %p1540_p6 = por %p1539_p5, %p1538_p4 }
   0xe   :  { %p1541_p7 = pnand %p1540_p6, %p1534_p3 }
  0x10   :  { %1544 = shalt.err (!%p1541_p7)
}
  0x11   :  { %s1618_s7 = smov 64   ;;  %s1619_s8 = smov 4  }
  0x12   :  { %37 = dma.hbm_to_vmem [thread:$0]  %s2173_s2, 1024, %s32_s22, [#allocation6], %s1618_s7, %s1618_s7, %s1619_s8  }
  0x13   :  { %s1620_s11 = smov [#allocation2]   ;;  %s1621_s13 = smov [#allocation7]  }
  0x14   :  { %s22_s12 = sshll.u32 %s1620_s11, 4  ;;  %s43_s14 = sshll.u32 %s1621_s13, 4  ;;  %s23_s12 = int_to_ptr.vmem [resolvable:$true] %s22_s12  ;;  %s44_s14 = int_to_ptr.vmem [resolvable:$true] %s43_s14 }
  0x15   :  { %s1545_s17 = scalar_lea.hbm %s2172_s1, 128 }
  0x16   :  { %p1546_p8 = scmp.ne.s32.totalorder %s2172_s1, %s1545_s17  ;;  %p1549_p9 = scmp.lt.u32.totalorder %s1545_s17, %s2172_s1 }
  0x18   :  { %p1551_p10 = pnand %p1549_p9, %p1546_p8 }
  0x1a   :  { %1554 = shalt.err (!%p1551_p10)
}
  0x1b   :  { %s1555_s2 = scalar_lea.vmem %s23_s12, 128  ;;  %p1560_p12 = scmp.lt.s32.totalorder %s23_s12, %s23_s12 }
  0x1c   :  { %p1556_p11 = scmp.ne.s32.totalorder %s23_s12, %s1555_s2  ;;  %p1561_p13 = scmp.lt.s32.totalorder %s1555_s2, %s1555_s2 }
  0x1e   :  { %p1562_p0 = por %p1561_p13, %p1560_p12 }
  0x20   :  { %p1563_p1 = pnand %p1562_p0, %p1556_p11 }
  0x22   :  { %1566 = shalt.err (!%p1563_p1)
}
  0x23   :  { %25 = dma.hbm_to_vmem [thread:$0]  %s2172_s1, 128, %s23_s12, [#allocation3]  }
  0x24   :  { %s1567_s26 = scalar_lea.hbm %s2174_s3, 1024 }
  0x25   :  { %p1568_p2 = scmp.ne.s32.totalorder %s2174_s3, %s1567_s26  ;;  %p1571_p3 = scmp.lt.u32.totalorder %s1567_s26, %s2174_s3 }
  0x27   :  { %p1573_p4 = pnand %p1571_p3, %p1568_p2 }
  0x29   :  { %1576 = shalt.err (!%p1573_p4)
}
  0x2a   :  { %s1577_s9 = scalar_lea.vmem %s44_s14, 1024  ;;  %p1582_p6 = scmp.lt.s32.totalorder %s44_s14, %s44_s14 }
  0x2b   :  { %p1578_p5 = scmp.ne.s32.totalorder %s44_s14, %s1577_s9  ;;  %p1583_p7 = scmp.lt.s32.totalorder %s1577_s9, %s1577_s9 }
  0x2d   :  { %p1584_p8 = por %p1583_p7, %p1582_p6 }
  0x2f   :  { %p1585_p9 = pnand %p1584_p8, %p1578_p5 }
  0x31   :  { %1588 = shalt.err (!%p1585_p9)
}
  0x32   :  { %49 = dma.hbm_to_vmem [thread:$0]  %s2174_s3, 1024, %s44_s14, [#allocation6], %s1618_s7, %s1618_s7, %s1619_s8  }
  0x33   :  { %1611 = dma.done.wait [#allocation3], 128  }
  0x34   :  { %1612 = vsyncadd [#allocation3], 4294967168 }
  0x35   :  { %1613 = dma.done.wait [#allocation6], 2048  }
  0x36   :  { %1614 = vsyncadd [#allocation6], 4294965248  ;;  %v66_v0 = vlaneseq  ;;  %v1153_v14 = vld [vmem:[%s2171_s0] ss:$0 sm:$0xff]  ;;  %v1481_v22 = vld [vmem:[#allocation7] sm:$0xff]   ;;  %v1622_v36 = vmov 0.0  }
  0x37   :  { %v65_v15 = vld [vmem:[#allocation2] sm:$0xff]  ;;  %1395 = vmatprep.mubr.bf16.mxu1 %v1481_v22  ;;  %v1483_v35 = vld [vmem:[#allocation5] sm:$0xff]   ;;  %s1626_s12 = smov [#allocation8]  }
  0x38   :  { %v1704_v1 = vshrl.u32 %v66_v0, 7  ;;  %1363 = vmatprep.mubr.bf16.mxu0 %v1483_v35  ;;  %s1143_s13 = sshll.u32 %s1626_s12, 4  ;;  %s1144_s13 = int_to_ptr.vmem [resolvable:$true] %s1143_s13 }
  0x39   :  { %s1589_s14 = scalar_lea.vmem %s1144_s13, 32  ;;  %p1594_p11 = scmp.lt.s32.totalorder %s1144_s13, %s1144_s13 }
  0x3a   :  { %v1707_v2 = vadd.s32 8, %v1704_v1  ;;  %v91_v3 = vsub.s32 0, %v1704_v1  ;;  %v159_v4 = vsub.s32 1, %v1704_v1  ;;  %v227_v5 = vsub.s32 2, %v1704_v1  ;;  %p1590_p10 = scmp.ne.s32.totalorder %s1144_s13, %s1589_s14  ;;  %p1595_p12 = scmp.lt.s32.totalorder %s1589_s14, %s1589_s14 }
  0x3b   :  { %v295_v6 = vsub.s32 3, %v1704_v1  ;;  %v363_v7 = vsub.s32 4, %v1704_v1  ;;  %v431_v8 = vsub.s32 5, %v1704_v1  ;;  %v499_v9 = vsub.s32 6, %v1704_v1 }
  0x3c   :  { %v567_v10 = vsub.s32 7, %v1704_v1  ;;  %v1718_v11 = vadd.s32 16, %v1704_v1  ;;  %v1721_v12 = vadd.s32 24, %v1704_v1  ;;  %v1724_v13 = vadd.s32 32, %v1704_v1  ;;  %p1596_p13 = por %p1595_p12, %p1594_p11 }
  0x3d   :  { %v1730_v16 = vadd.s32 40, %v1704_v1  ;;  %v1733_v17 = vadd.s32 48, %v1704_v1  ;;  %v1736_v18 = vadd.s32 56, %v1704_v1  ;;  %vm72_vm0 = vcmp.lt.s32.totalorder %v1704_v1, %v1153_v14 }
  0x3e   :  { %v1740_v19 = vadd.s32 64, %v1704_v1  ;;  %v1743_v20 = vadd.s32 72, %v1704_v1  ;;  %v1746_v21 = vadd.s32 80, %v1704_v1  ;;  %v73_v23 = vsel %vm72_vm0, %v65_v15, 4294967295  ;;  %p1597_p0 = pnand %p1596_p13, %p1590_p10 }
  0x3f   :  { %v1749_v24 = vadd.s32 88, %v1704_v1  ;;  %v1752_v25 = vadd.s32 96, %v1704_v1  ;;  %v1755_v26 = vadd.s32 104, %v1704_v1  ;;  %v1757_v27 = vrot.slane %v73_v23, %v91_v3 }
  0x40   :  { %v1759_v28 = vrot.slane %v73_v23, %v159_v4  ;;  %v1761_v29 = vrot.slane %v73_v23, %v227_v5  ;;  %v1763_v30 = vrot.slane %v73_v23, %v295_v6  ;;  %v1765_v31 = vrot.slane %v73_v23, %v363_v7 }
  0x41   :  { %v1767_v32 = vrot.slane %v73_v23, %v431_v8  ;;  %v1769_v33 = vrot.slane %v73_v23, %v499_v9  ;;  %v1771_v34 = vrot.slane %v73_v23, %v567_v10  ;;  %vm93_vm1 = vcmp.eq.s32.totalorder %v1704_v1, %v1757_v27 }
  0x42   :  { %vm94_vm2 = vcmp.eq.s32.totalorder %v1707_v2, %v1757_v27  ;;  %vm161_vm3 = vcmp.eq.s32.totalorder %v1704_v1, %v1759_v28  ;;  %vm162_vm4 = vcmp.eq.s32.totalorder %v1707_v2, %v1759_v28  ;;  %v1154_v37 = vsel %vm93_vm1, 1.0, %v1622_v36 }
  0x43   :  { %v1155_v38 = vsel %vm94_vm2, 1.0, %v1622_v36  ;;  %v1170_v39 = vsel %vm161_vm3, 1.0, %v1622_v36  ;;  %v1171_v40 = vsel %vm162_vm4, 1.0, %v1622_v36  ;;  %vm229_vm5 = vcmp.eq.s32.totalorder %v1704_v1, %v1761_v29 }
  0x44   :  { %v209_v41 = vadd.f32 %v1170_v39, %v1154_v37  ;;  %v210_v42 = vadd.f32 %v1171_v40, %v1155_v38  ;;  %vm230_vm6 = vcmp.eq.s32.totalorder %v1707_v2, %v1761_v29  ;;  %v1186_v43 = vsel %vm229_vm5, 1.0, %v1622_v36 }
  0x45   :  { %v1187_v44 = vsel %vm230_vm6, 1.0, %v1622_v36  ;;  %vm297_vm7 = vcmp.eq.s32.totalorder %v1704_v1, %v1763_v30  ;;  %vm298_vm8 = vcmp.eq.s32.totalorder %v1707_v2, %v1763_v30  ;;  %vm365_vm9 = vcmp.eq.s32.totalorder %v1704_v1, %v1765_v31 }
  0x46   :  { %v277_v45 = vadd.f32 %v1186_v43, %v209_v41  ;;  %v278_v46 = vadd.f32 %v1187_v44, %v210_v42  ;;  %v1202_v47 = vsel %vm297_vm7, 1.0, %v1622_v36  ;;  %v1203_v48 = vsel %vm298_vm8, 1.0, %v1622_v36 }
  0x47   :  { %vm366_vm10 = vcmp.eq.s32.totalorder %v1707_v2, %v1765_v31  ;;  %vm433_vm11 = vcmp.eq.s32.totalorder %v1704_v1, %v1767_v32  ;;  %vm434_vm12 = vcmp.eq.s32.totalorder %v1707_v2, %v1767_v32  ;;  %v1218_v51 = vsel %vm365_vm9, 1.0, %v1622_v36 }
  0x48   :  { %v345_v49 = vadd.f32 %v1202_v47, %v277_v45  ;;  %v346_v50 = vadd.f32 %v1203_v48, %v278_v46  ;;  %v1219_v52 = vsel %vm366_vm10, 1.0, %v1622_v36  ;;  %v1234_v53 = vsel %vm433_vm11, 1.0, %v1622_v36 }
  0x49   :  { %v1235_v54 = vsel %vm434_vm12, 1.0, %v1622_v36  ;;  %vm501_vm13 = vcmp.eq.s32.totalorder %v1704_v1, %v1769_v33  ;;  %vm502_vm14 = vcmp.eq.s32.totalorder %v1707_v2, %v1769_v33  ;;  %vm569_vm15 = vcmp.eq.s32.totalorder %v1704_v1, %v1771_v34 }
  0x4a   :  { %v413_v55 = vadd.f32 %v1218_v51, %v345_v49  ;;  %v414_v56 = vadd.f32 %v1219_v52, %v346_v50  ;;  %v1250_v57 = vsel %vm501_vm13, 1.0, %v1622_v36  ;;  %v1251_v58 = vsel %vm502_vm14, 1.0, %v1622_v36 }
  0x4b   :  { %vm570_vm0 = vcmp.eq.s32.totalorder %v1707_v2, %v1771_v34  ;;  %vm95_vm1 = vcmp.eq.s32.totalorder %v1718_v11, %v1757_v27  ;;  %vm96_vm2 = vcmp.eq.s32.totalorder %v1721_v12, %v1757_v27  ;;  %v1266_v61 = vsel %vm569_vm15, 1.0, %v1622_v36 }
  0x4c   :  { %v481_v59 = vadd.f32 %v1234_v53, %v413_v55  ;;  %v482_v60 = vadd.f32 %v1235_v54, %v414_v56  ;;  %v1267_v62 = vsel %vm570_vm0, 1.0, %v1622_v36  ;;  %v1156_v63 = vsel %vm95_vm1, 1.0, %v1622_v36 }
  0x4d   :  { %v1157_v0 = vsel %vm96_vm2, 1.0, %v1622_v36  ;;  %vm163_vm3 = vcmp.eq.s32.totalorder %v1718_v11, %v1759_v28  ;;  %vm164_vm4 = vcmp.eq.s32.totalorder %v1721_v12, %v1759_v28  ;;  %vm231_vm5 = vcmp.eq.s32.totalorder %v1718_v11, %v1761_v29 }
  0x4e   :  { %v549_v2 = vadd.f32 %v1250_v57, %v481_v59  ;;  %v550_v3 = vadd.f32 %v1251_v58, %v482_v60  ;;  %v1172_v4 = vsel %vm163_vm3, 1.0, %v1622_v36  ;;  %v1173_v5 = vsel %vm164_vm4, 1.0, %v1622_v36 }
  0x4f   :  { %v211_v6 = vadd.f32 %v1172_v4, %v1156_v63  ;;  %v212_v7 = vadd.f32 %v1173_v5, %v1157_v0  ;;  %vm232_vm6 = vcmp.eq.s32.totalorder %v1721_v12, %v1761_v29  ;;  %v1188_v10 = vsel %vm231_vm5, 1.0, %v1622_v36 }
  0x50   :  { %v617_v8 = vadd.f32 %v1266_v61, %v549_v2  ;;  %v618_v9 = vadd.f32 %v1267_v62, %v550_v3  ;;  %v1189_v14 = vsel %vm232_vm6, 1.0, %v1622_v36  ;;  %vm299_vm7 = vcmp.eq.s32.totalorder %v1718_v11, %v1763_v30 }
  0x51   :  { %v279_v15 = vadd.f32 %v1188_v10, %v211_v6  ;;  %v280_v22 = vadd.f32 %v1189_v14, %v212_v7  ;;  %vm300_vm8 = vcmp.eq.s32.totalorder %v1721_v12, %v1763_v30  ;;  %v1204_v35 = vsel %vm299_vm7, 1.0, %v1622_v36 }
  0x52   :  { %v633_v23 = vpack.c.bf16 %v618_v9, %v617_v8  ;;  %v1205_v37 = vsel %vm300_vm8, 1.0, %v1622_v36  ;;  %vm367_vm9 = vcmp.eq.s32.totalorder %v1718_v11, %v1765_v31  ;;  %vm368_vm10 = vcmp.eq.s32.totalorder %v1721_v12, %v1765_v31 }
  0x53   :  { %v347_v38 = vadd.f32 %v1204_v35, %v279_v15  ;;  %v348_v39 = vadd.f32 %v1205_v37, %v280_v22  ;;  %v1220_v40 = vsel %vm367_vm9, 1.0, %v1622_v36  ;;  %v1221_v41 = vsel %vm368_vm10, 1.0, %v1622_v36 }
  0x54   :  { %1379 = vmatprep.subr.bf16.mxu1 %v633_v23  ;;  %vm435_vm11 = vcmp.eq.s32.totalorder %v1718_v11, %v1767_v32  ;;  %vm436_vm12 = vcmp.eq.s32.totalorder %v1721_v12, %v1767_v32  ;;  %vm503_vm13 = vcmp.eq.s32.totalorder %v1718_v11, %v1769_v33  ;;  %1347 = vmatprep.subr.bf16.mxu0 %v633_v23 }
  0x55   :  { %1380 = vmatpush3.bf16.msra.mxu1 %v633_v23  ;;  %v415_v42 = vadd.f32 %v1220_v40, %v347_v38  ;;  %v416_v43 = vadd.f32 %v1221_v41, %v348_v39  ;;  %v1236_v44 = vsel %vm435_vm11, 1.0, %v1622_v36  ;;  %v1237_v45 = vsel %vm436_vm12, 1.0, %v1622_v36  ;;  %1348 = vmatpush3.bf16.msra.mxu0 %v633_v23 }
  0x56   :  { %vm504_vm14 = vcmp.eq.s32.totalorder %v1721_v12, %v1769_v33  ;;  %v1252_v46 = vsel %vm503_vm13, 1.0, %v1622_v36  ;;  %vm571_vm15 = vcmp.eq.s32.totalorder %v1718_v11, %v1771_v34  ;;  %vm572_vm0 = vcmp.eq.s32.totalorder %v1721_v12, %v1771_v34 }
  0x57   :  { %v483_v47 = vadd.f32 %v1236_v44, %v415_v42  ;;  %v484_v48 = vadd.f32 %v1237_v45, %v416_v43  ;;  %v1253_v49 = vsel %vm504_vm14, 1.0, %v1622_v36  ;;  %v1268_v50 = vsel %vm571_vm15, 1.0, %v1622_v36 }
  0x58   :  { %v1269_v51 = vsel %vm572_vm0, 1.0, %v1622_v36  ;;  %vm97_vm1 = vcmp.eq.s32.totalorder %v1724_v13, %v1757_v27  ;;  %vm98_vm2 = vcmp.eq.s32.totalorder %v1730_v16, %v1757_v27  ;;  %vm165_vm3 = vcmp.eq.s32.totalorder %v1724_v13, %v1759_v28 }
  0x59   :  { %v551_v11 = vadd.f32 %v1252_v46, %v483_v47  ;;  %v552_v52 = vadd.f32 %v1253_v49, %v484_v48  ;;  %v1158_v12 = vsel %vm97_vm1, 1.0, %v1622_v36  ;;  %v1159_v53 = vsel %vm98_vm2, 1.0, %v1622_v36 }
  0x5a   :  { %vm166_vm4 = vcmp.eq.s32.totalorder %v1730_v16, %v1759_v28  ;;  %v1174_v54 = vsel %vm165_vm3, 1.0, %v1622_v36  ;;  %vm233_vm5 = vcmp.eq.s32.totalorder %v1724_v13, %v1761_v29  ;;  %vm234_vm6 = vcmp.eq.s32.totalorder %v1730_v16, %v1761_v29 }
  0x5b   :  { %v619_v55 = vadd.f32 %v1268_v50, %v551_v11  ;;  %v620_v56 = vadd.f32 %v1269_v51, %v552_v52  ;;  %v1175_v57 = vsel %vm166_vm4, 1.0, %v1622_v36  ;;  %v213_v58 = vadd.f32 %v1174_v54, %v1158_v12 }
  0x5c   :  { %v214_v59 = vadd.f32 %v1175_v57, %v1159_v53  ;;  %v1190_v60 = vsel %vm233_vm5, 1.0, %v1622_v36  ;;  %v1191_v61 = vsel %vm234_vm6, 1.0, %v1622_v36  ;;  %vm301_vm7 = vcmp.eq.s32.totalorder %v1724_v13, %v1763_v30 }
  0x5d   :  { %v634_v62 = vpack.c.bf16 %v620_v56, %v619_v55  ;;  %v281_v63 = vadd.f32 %v1190_v60, %v213_v58  ;;  %vm302_vm8 = vcmp.eq.s32.totalorder %v1730_v16, %v1763_v30  ;;  %v1206_v0 = vsel %vm301_vm7, 1.0, %v1622_v36 }
  0x5e   :  { %v282_v2 = vadd.f32 %v1191_v61, %v214_v59  ;;  %v1207_v3 = vsel %vm302_vm8, 1.0, %v1622_v36  ;;  %vm369_vm9 = vcmp.eq.s32.totalorder %v1724_v13, %v1765_v31  ;;  %vm370_vm10 = vcmp.eq.s32.totalorder %v1730_v16, %v1765_v31 }
  0x5f   :  { %1381 = vmatprep.subr.bf16.mxu1 %v634_v62  ;;  %v349_v4 = vadd.f32 %v1206_v0, %v281_v63  ;;  %v1222_v5 = vsel %vm369_vm9, 1.0, %v1622_v36  ;;  %v1223_v6 = vsel %vm370_vm10, 1.0, %v1622_v36  ;;  %vm437_vm11 = vcmp.eq.s32.totalorder %v1724_v13, %v1767_v32  ;;  %1349 = vmatprep.subr.bf16.mxu0 %v634_v62 }
  0x60   :  { %1382 = vmatpush3.bf16.msra.mxu1 %v634_v62  ;;  %v350_v7 = vadd.f32 %v1207_v3, %v282_v2  ;;  %vm438_vm12 = vcmp.eq.s32.totalorder %v1730_v16, %v1767_v32  ;;  %v1238_v8 = vsel %vm437_vm11, 1.0, %v1622_v36  ;;  %vm505_vm13 = vcmp.eq.s32.totalorder %v1724_v13, %v1769_v33  ;;  %1350 = vmatpush3.bf16.msra.mxu0 %v634_v62 }
  0x61   :  { %v417_v9 = vadd.f32 %v1222_v5, %v349_v4  ;;  %v1239_v10 = vsel %vm438_vm12, 1.0, %v1622_v36  ;;  %vm506_vm14 = vcmp.eq.s32.totalorder %v1730_v16, %v1769_v33  ;;  %v1254_v14 = vsel %vm505_vm13, 1.0, %v1622_v36 }
  0x62   :  { %v418_v15 = vadd.f32 %v1223_v6, %v350_v7  ;;  %v1255_v22 = vsel %vm506_vm14, 1.0, %v1622_v36  ;;  %vm573_vm15 = vcmp.eq.s32.totalorder %v1724_v13, %v1771_v34  ;;  %vm574_vm0 = vcmp.eq.s32.totalorder %v1730_v16, %v1771_v34 }
  0x63   :  { %v485_v23 = vadd.f32 %v1238_v8, %v417_v9  ;;  %v1270_v35 = vsel %vm573_vm15, 1.0, %v1622_v36  ;;  %v1271_v37 = vsel %vm574_vm0, 1.0, %v1622_v36  ;;  %vm99_vm1 = vcmp.eq.s32.totalorder %v1733_v17, %v1757_v27 }
  0x64   :  { %v486_v38 = vadd.f32 %v1239_v10, %v418_v15  ;;  %vm100_vm2 = vcmp.eq.s32.totalorder %v1736_v18, %v1757_v27  ;;  %v1160_v39 = vsel %vm99_vm1, 1.0, %v1622_v36  ;;  %vm167_vm3 = vcmp.eq.s32.totalorder %v1733_v17, %v1759_v28 }
  0x65   :  { %v553_v13 = vadd.f32 %v1254_v14, %v485_v23  ;;  %v1161_v16 = vsel %vm100_vm2, 1.0, %v1622_v36  ;;  %vm168_vm4 = vcmp.eq.s32.totalorder %v1736_v18, %v1759_v28  ;;  %v1176_v40 = vsel %vm167_vm3, 1.0, %v1622_v36 }
  0x66   :  { %v554_v41 = vadd.f32 %v1255_v22, %v486_v38  ;;  %v1177_v42 = vsel %vm168_vm4, 1.0, %v1622_v36  ;;  %v215_v43 = vadd.f32 %v1176_v40, %v1160_v39  ;;  %vm235_vm5 = vcmp.eq.s32.totalorder %v1733_v17, %v1761_v29 }
  0x67   :  { %v621_v44 = vadd.f32 %v1270_v35, %v553_v13  ;;  %v216_v45 = vadd.f32 %v1177_v42, %v1161_v16  ;;  %vm236_vm6 = vcmp.eq.s32.totalorder %v1736_v18, %v1761_v29  ;;  %v1192_v46 = vsel %vm235_vm5, 1.0, %v1622_v36 }
  0x68   :  { %v622_v47 = vadd.f32 %v1271_v37, %v554_v41  ;;  %v1193_v48 = vsel %vm236_vm6, 1.0, %v1622_v36  ;;  %v283_v49 = vadd.f32 %v1192_v46, %v215_v43  ;;  %vm303_vm7 = vcmp.eq.s32.totalorder %v1733_v17, %v1763_v30 }
  0x69   :  { %v284_v50 = vadd.f32 %v1193_v48, %v216_v45  ;;  %vm304_vm8 = vcmp.eq.s32.totalorder %v1736_v18, %v1763_v30  ;;  %v1208_v51 = vsel %vm303_vm7, 1.0, %v1622_v36  ;;  %vm371_vm9 = vcmp.eq.s32.totalorder %v1733_v17, %v1765_v31 }
  0x6a   :  { %v635_v11 = vpack.c.bf16 %v622_v47, %v621_v44  ;;  %v1209_v52 = vsel %vm304_vm8, 1.0, %v1622_v36  ;;  %v351_v12 = vadd.f32 %v1208_v51, %v283_v49  ;;  %vm372_vm10 = vcmp.eq.s32.totalorder %v1736_v18, %v1765_v31 }
  0x6b   :  { %v352_v53 = vadd.f32 %v1209_v52, %v284_v50  ;;  %v1224_v54 = vsel %vm371_vm9, 1.0, %v1622_v36  ;;  %v1225_v55 = vsel %vm372_vm10, 1.0, %v1622_v36  ;;  %vm439_vm11 = vcmp.eq.s32.totalorder %v1733_v17, %v1767_v32 }
  0x6c   :  { %1383 = vmatprep.subr.bf16.mxu1 %v635_v11  ;;  %v419_v56 = vadd.f32 %v1224_v54, %v351_v12  ;;  %vm440_vm12 = vcmp.eq.s32.totalorder %v1736_v18, %v1767_v32  ;;  %v1240_v57 = vsel %vm439_vm11, 1.0, %v1622_v36  ;;  %vm507_vm13 = vcmp.eq.s32.totalorder %v1733_v17, %v1769_v33  ;;  %1351 = vmatprep.subr.bf16.mxu0 %v635_v11 }
  0x6d   :  { %1384 = vmatpush3.bf16.msra.mxu1 %v635_v11  ;;  %v420_v58 = vadd.f32 %v1225_v55, %v352_v53  ;;  %v1241_v59 = vsel %vm440_vm12, 1.0, %v1622_v36  ;;  %vm508_vm14 = vcmp.eq.s32.totalorder %v1736_v18, %v1769_v33  ;;  %v1256_v60 = vsel %vm507_vm13, 1.0, %v1622_v36  ;;  %1352 = vmatpush3.bf16.msra.mxu0 %v635_v11 }
  0x6e   :  { %v487_v61 = vadd.f32 %v1240_v57, %v419_v56  ;;  %v1257_v62 = vsel %vm508_vm14, 1.0, %v1622_v36  ;;  %vm575_vm15 = vcmp.eq.s32.totalorder %v1733_v17, %v1771_v34  ;;  %vm576_vm0 = vcmp.eq.s32.totalorder %v1736_v18, %v1771_v34 }
  0x6f   :  { %v488_v63 = vadd.f32 %v1241_v59, %v420_v58  ;;  %v1272_v0 = vsel %vm575_vm15, 1.0, %v1622_v36  ;;  %v1273_v2 = vsel %vm576_vm0, 1.0, %v1622_v36  ;;  %vm101_vm1 = vcmp.eq.s32.totalorder %v1740_v19, %v1757_v27 }
  0x70   :  { %v555_v3 = vadd.f32 %v1256_v60, %v487_v61  ;;  %vm102_vm2 = vcmp.eq.s32.totalorder %v1743_v20, %v1757_v27  ;;  %v1162_v4 = vsel %vm101_vm1, 1.0, %v1622_v36  ;;  %vm169_vm3 = vcmp.eq.s32.totalorder %v1740_v19, %v1759_v28 }
  0x71   :  { %v556_v17 = vadd.f32 %v1257_v62, %v488_v63  ;;  %v1163_v18 = vsel %vm102_vm2, 1.0, %v1622_v36  ;;  %vm170_vm4 = vcmp.eq.s32.totalorder %v1743_v20, %v1759_v28  ;;  %v1178_v5 = vsel %vm169_vm3, 1.0, %v1622_v36 }
  0x72   :  { %v623_v6 = vadd.f32 %v1272_v0, %v555_v3  ;;  %v1179_v7 = vsel %vm170_vm4, 1.0, %v1622_v36  ;;  %v217_v8 = vadd.f32 %v1178_v5, %v1162_v4  ;;  %vm237_vm5 = vcmp.eq.s32.totalorder %v1740_v19, %v1761_v29 }
  0x73   :  { %v624_v9 = vadd.f32 %v1273_v2, %v556_v17  ;;  %v218_v10 = vadd.f32 %v1179_v7, %v1163_v18  ;;  %vm238_vm6 = vcmp.eq.s32.totalorder %v1743_v20, %v1761_v29  ;;  %v1194_v14 = vsel %vm237_vm5, 1.0, %v1622_v36 }
  0x74   :  { %v1195_v15 = vsel %vm238_vm6, 1.0, %v1622_v36  ;;  %v285_v22 = vadd.f32 %v1194_v14, %v217_v8  ;;  %vm305_vm7 = vcmp.eq.s32.totalorder %v1740_v19, %v1763_v30  ;;  %vm306_vm8 = vcmp.eq.s32.totalorder %v1743_v20, %v1763_v30 }
  0x75   :  { %v636_v23 = vpack.c.bf16 %v624_v9, %v623_v6  ;;  %v286_v35 = vadd.f32 %v1195_v15, %v218_v10  ;;  %v1210_v37 = vsel %vm305_vm7, 1.0, %v1622_v36  ;;  %v1211_v38 = vsel %vm306_vm8, 1.0, %v1622_v36 }
  0x76   :  { %v353_v39 = vadd.f32 %v1210_v37, %v285_v22  ;;  %vm373_vm9 = vcmp.eq.s32.totalorder %v1740_v19, %v1765_v31  ;;  %vm374_vm10 = vcmp.eq.s32.totalorder %v1743_v20, %v1765_v31  ;;  %vm441_vm11 = vcmp.eq.s32.totalorder %v1740_v19, %v1767_v32 }
  0x77   :  { %1385 = vmatprep.subr.bf16.mxu1 %v636_v23  ;;  %v354_v13 = vadd.f32 %v1211_v38, %v286_v35  ;;  %v1226_v16 = vsel %vm373_vm9, 1.0, %v1622_v36  ;;  %v1227_v40 = vsel %vm374_vm10, 1.0, %v1622_v36  ;;  %vm442_vm12 = vcmp.eq.s32.totalorder %v1743_v20, %v1767_v32  ;;  %1353 = vmatprep.subr.bf16.mxu0 %v636_v23 }
  0x78   :  { %1386 = vmatpush3.bf16.msra.mxu1 %v636_v23  ;;  %v421_v41 = vadd.f32 %v1226_v16, %v353_v39  ;;  %v1242_v42 = vsel %vm441_vm11, 1.0, %v1622_v36  ;;  %v1243_v43 = vsel %vm442_vm12, 1.0, %v1622_v36  ;;  %vm509_vm13 = vcmp.eq.s32.totalorder %v1740_v19, %v1769_v33  ;;  %1354 = vmatpush3.bf16.msra.mxu0 %v636_v23 }
  0x79   :  { %v422_v44 = vadd.f32 %v1227_v40, %v354_v13  ;;  %vm510_vm14 = vcmp.eq.s32.totalorder %v1743_v20, %v1769_v33  ;;  %v1258_v45 = vsel %vm509_vm13, 1.0, %v1622_v36  ;;  %vm577_vm15 = vcmp.eq.s32.totalorder %v1740_v19, %v1771_v34 }
  0x7a   :  { %v489_v46 = vadd.f32 %v1242_v42, %v421_v41  ;;  %v1259_v47 = vsel %vm510_vm14, 1.0, %v1622_v36  ;;  %vm578_vm0 = vcmp.eq.s32.totalorder %v1743_v20, %v1771_v34  ;;  %v1274_v48 = vsel %vm577_vm15, 1.0, %v1622_v36 }
  0x7b   :  { %v490_v49 = vadd.f32 %v1243_v43, %v422_v44  ;;  %v1275_v50 = vsel %vm578_vm0, 1.0, %v1622_v36  ;;  %vm103_vm1 = vcmp.eq.s32.totalorder %v1746_v21, %v1757_v27  ;;  %vm104_vm2 = vcmp.eq.s32.totalorder %v1749_v24, %v1757_v27 }
  0x7c   :  { %v557_v51 = vadd.f32 %v1258_v45, %v489_v46  ;;  %v1164_v19 = vsel %vm103_vm1, 1.0, %v1622_v36  ;;  %v1165_v11 = vsel %vm104_vm2, 1.0, %v1622_v36  ;;  %vm171_vm3 = vcmp.eq.s32.totalorder %v1746_v21, %v1759_v28 }
  0x7d   :  { %v558_v20 = vadd.f32 %v1259_v47, %v490_v49  ;;  %vm172_vm4 = vcmp.eq.s32.totalorder %v1749_v24, %v1759_v28  ;;  %v1180_v52 = vsel %vm171_vm3, 1.0, %v1622_v36  ;;  %vm239_vm5 = vcmp.eq.s32.totalorder %v1746_v21, %v1761_v29 }
  0x7e   :  { %v625_v12 = vadd.f32 %v1274_v48, %v557_v51  ;;  %v1181_v53 = vsel %vm172_vm4, 1.0, %v1622_v36  ;;  %v219_v54 = vadd.f32 %v1180_v52, %v1164_v19  ;;  %vm240_vm6 = vcmp.eq.s32.totalorder %v1749_v24, %v1761_v29 }
  0x7f   :  { %v626_v55 = vadd.f32 %v1275_v50, %v558_v20  ;;  %v220_v56 = vadd.f32 %v1181_v53, %v1165_v11  ;;  %v1196_v57 = vsel %vm239_vm5, 1.0, %v1622_v36  ;;  %v1197_v58 = vsel %vm240_vm6, 1.0, %v1622_v36 }
  0x80   :  { %v287_v59 = vadd.f32 %v1196_v57, %v219_v54  ;;  %vm307_vm7 = vcmp.eq.s32.totalorder %v1746_v21, %v1763_v30  ;;  %vm308_vm8 = vcmp.eq.s32.totalorder %v1749_v24, %v1763_v30  ;;  %vm375_vm9 = vcmp.eq.s32.totalorder %v1746_v21, %v1765_v31 }
  0x81   :  { %v637_v60 = vpack.c.bf16 %v626_v55, %v625_v12  ;;  %v288_v61 = vadd.f32 %v1197_v58, %v220_v56  ;;  %v1212_v62 = vsel %vm307_vm7, 1.0, %v1622_v36  ;;  %v1213_v63 = vsel %vm308_vm8, 1.0, %v1622_v36 }
  0x82   :  { %v355_v0 = vadd.f32 %v1212_v62, %v287_v59  ;;  %vm376_vm10 = vcmp.eq.s32.totalorder %v1749_v24, %v1765_v31  ;;  %v1228_v2 = vsel %vm375_vm9, 1.0, %v1622_v36  ;;  %vm443_vm11 = vcmp.eq.s32.totalorder %v1746_v21, %v1767_v32 }
  0x83   :  { %1387 = vmatprep.subr.bf16.mxu1 %v637_v60  ;;  %v356_v3 = vadd.f32 %v1213_v63, %v288_v61  ;;  %v1229_v4 = vsel %vm376_vm10, 1.0, %v1622_v36  ;;  %vm444_vm12 = vcmp.eq.s32.totalorder %v1749_v24, %v1767_v32  ;;  %v1244_v17 = vsel %vm443_vm11, 1.0, %v1622_v36  ;;  %1355 = vmatprep.subr.bf16.mxu0 %v637_v60 }
  0x84   :  { %1388 = vmatpush3.bf16.msra.mxu1 %v637_v60  ;;  %v423_v18 = vadd.f32 %v1228_v2, %v355_v0  ;;  %v1245_v5 = vsel %vm444_vm12, 1.0, %v1622_v36  ;;  %vm511_vm13 = vcmp.eq.s32.totalorder %v1746_v21, %v1769_v33  ;;  %vm512_vm14 = vcmp.eq.s32.totalorder %v1749_v24, %v1769_v33  ;;  %1356 = vmatpush3.bf16.msra.mxu0 %v637_v60 }
  0x85   :  { %v424_v6 = vadd.f32 %v1229_v4, %v356_v3  ;;  %v1260_v7 = vsel %vm511_vm13, 1.0, %v1622_v36  ;;  %v1261_v8 = vsel %vm512_vm14, 1.0, %v1622_v36  ;;  %vm579_vm15 = vcmp.eq.s32.totalorder %v1746_v21, %v1771_v34 }
  0x86   :  { %v491_v9 = vadd.f32 %v1244_v17, %v423_v18  ;;  %vm580_vm0 = vcmp.eq.s32.totalorder %v1749_v24, %v1771_v34  ;;  %v1276_v10 = vsel %vm579_vm15, 1.0, %v1622_v36  ;;  %vm105_vm1 = vcmp.eq.s32.totalorder %v1752_v25, %v1757_v27 }
  0x87   :  { %v492_v14 = vadd.f32 %v1245_v5, %v424_v6  ;;  %v1277_v15 = vsel %vm580_vm0, 1.0, %v1622_v36  ;;  %vm106_vm2 = vcmp.eq.s32.totalorder %v1755_v26, %v1757_v27  ;;  %v1166_v22 = vsel %vm105_vm1, 1.0, %v1622_v36 }
  0x88   :  { %v559_v23 = vadd.f32 %v1260_v7, %v491_v9  ;;  %v1167_v21 = vsel %vm106_vm2, 1.0, %v1622_v36  ;;  %vm173_vm3 = vcmp.eq.s32.totalorder %v1752_v25, %v1759_v28  ;;  %vm174_vm4 = vcmp.eq.s32.totalorder %v1755_v26, %v1759_v28 }
  0x89   :  { %v560_v24 = vadd.f32 %v1261_v8, %v492_v14  ;;  %v1182_v35 = vsel %vm173_vm3, 1.0, %v1622_v36  ;;  %v1183_v37 = vsel %vm174_vm4, 1.0, %v1622_v36  ;;  %vm241_vm5 = vcmp.eq.s32.totalorder %v1752_v25, %v1761_v29 }
  0x8a   :  { %v627_v38 = vadd.f32 %v1276_v10, %v559_v23  ;;  %v221_v39 = vadd.f32 %v1182_v35, %v1166_v22  ;;  %v222_v13 = vadd.f32 %v1183_v37, %v1167_v21  ;;  %vm242_vm6 = vcmp.eq.s32.totalorder %v1755_v26, %v1761_v29 }
  0x8b   :  { %v628_v16 = vadd.f32 %v1277_v15, %v560_v24  ;;  %v1198_v40 = vsel %vm241_vm5, 1.0, %v1622_v36  ;;  %v1199_v41 = vsel %vm242_vm6, 1.0, %v1622_v36  ;;  %vm309_vm7 = vcmp.eq.s32.totalorder %v1752_v25, %v1763_v30 }
  0x8c   :  { %v289_v42 = vadd.f32 %v1198_v40, %v221_v39  ;;  %v290_v43 = vadd.f32 %v1199_v41, %v222_v13  ;;  %vm310_vm8 = vcmp.eq.s32.totalorder %v1755_v26, %v1763_v30  ;;  %v1214_v44 = vsel %vm309_vm7, 1.0, %v1622_v36  ;;  %v1482_v13 = vld [vmem:[#allocation7 + $0x8] sm:$0xff]   ;;  %v1484_v40 = vld [vmem:[#allocation7 + $0x10] sm:$0xff]  }
  0x8d   :  { %v638_v45 = vpack.c.bf16 %v628_v16, %v627_v38  ;;  %v1215_v46 = vsel %vm310_vm8, 1.0, %v1622_v36  ;;  %vm377_vm9 = vcmp.eq.s32.totalorder %v1752_v25, %v1765_v31  ;;  %vm378_vm10 = vcmp.eq.s32.totalorder %v1755_v26, %v1765_v31  ;;  %v1485_v16 = vld [vmem:[#allocation5 + $0x8] sm:$0xff]   ;;  %v1487_v41 = vld [vmem:[#allocation5 + $0x10] sm:$0xff]  }
  0x8e   :  { %v357_v47 = vadd.f32 %v1214_v44, %v289_v42  ;;  %v358_v48 = vadd.f32 %v1215_v46, %v290_v43  ;;  %v1230_v49 = vsel %vm377_vm9, 1.0, %v1622_v36  ;;  %v1231_v50 = vsel %vm378_vm10, 1.0, %v1622_v36  ;;  %v1489_v42 = vld [vmem:[#allocation5 + $0x18] sm:$0xff]   ;;  %v1488_v43 = vld [vmem:[#allocation7 + $0x20] sm:$0xff]   ;;  %v1493_v46 = vld [vmem:[#allocation5 + $0x28] sm:$0xff]  }
  0x8f   :  { %1389 = vmatprep.subr.bf16.mxu1 %v638_v45  ;;  %vm445_vm11 = vcmp.eq.s32.totalorder %v1752_v25, %v1767_v32  ;;  %vm446_vm12 = vcmp.eq.s32.totalorder %v1755_v26, %v1767_v32  ;;  %vm513_vm13 = vcmp.eq.s32.totalorder %v1752_v25, %v1769_v33  ;;  %vm514_vm14 = vcmp.eq.s32.totalorder %v1755_v26, %v1769_v33  ;;  %v1491_v44 = vld [vmem:[#allocation5 + $0x20] sm:$0xff]  }
  0x90   :  { %1390 = vmatpush3.bf16.msra.mxu1 %v638_v45  ;;  %v425_v51 = vadd.f32 %v1230_v49, %v357_v47  ;;  %v426_v19 = vadd.f32 %v1231_v50, %v358_v48  ;;  %v1246_v11 = vsel %vm445_vm11, 1.0, %v1622_v36  ;;  %v1247_v20 = vsel %vm446_vm12, 1.0, %v1622_v36  ;;  %1357 = vmatprep.subr.bf16.mxu0 %v638_v45  ;;  %v1492_v47 = vld [vmem:[#allocation7 + $0x30] sm:$0xff]   ;;  %v1494_v49 = vld [vmem:[#allocation7 + $0x38] sm:$0xff]  }
  0x91   :  { %v1262_v52 = vsel %vm513_vm13, 1.0, %v1622_v36  ;;  %v1263_v12 = vsel %vm514_vm14, 1.0, %v1622_v36  ;;  %vm581_vm15 = vcmp.eq.s32.totalorder %v1752_v25, %v1771_v34  ;;  %vm582_vm0 = vcmp.eq.s32.totalorder %v1755_v26, %v1771_v34  ;;  %1358 = vmatpush3.bf16.msra.mxu0 %v638_v45  ;;  %v1490_v45 = vld [vmem:[#allocation7 + $0x28] sm:$0xff]   ;;  %v1495_v48 = vld [vmem:[#allocation5 + $0x30] sm:$0xff]   ;;  %v1496_v50 = vld [vmem:[#allocation5 + $0x38] sm:$0xff]  }
  0x92   :  { %v493_v53 = vadd.f32 %v1246_v11, %v425_v51  ;;  %v494_v54 = vadd.f32 %v1247_v20, %v426_v19  ;;  %v1278_v55 = vsel %vm581_vm15, 1.0, %v1622_v36  ;;  %v1279_v56 = vsel %vm582_vm0, 1.0, %v1622_v36  ;;  %v1060_v19 = vld [vmem:[%s2176_s5] sm:$0x3] }
  0x93   :  { %v87_v57 = vadd.s32 112, %v1704_v1  ;;  %v88_v58 = vadd.s32 120, %v1704_v1  ;;  %v1623_v51 = vmov 0.0|0.0   ;;  %v1625_v11 = vmov 0  }
  0x94   :  { %v561_v59 = vadd.f32 %v1262_v52, %v493_v53  ;;  %v562_v60 = vadd.f32 %v1263_v12, %v494_v54  ;;  %1480 = vset.pattern.permute.xlu0 %v1625_v11 }
  0x95   :  { %vm107_vm1 = vcmp.eq.s32.totalorder %v87_v57, %v1757_v27  ;;  %vm108_vm2 = vcmp.eq.s32.totalorder %v88_v58, %v1757_v27  ;;  %vm175_vm3 = vcmp.eq.s32.totalorder %v87_v57, %v1759_v28  ;;  %vm176_vm4 = vcmp.eq.s32.totalorder %v88_v58, %v1759_v28  ;;  %1063 = vperm.xlu0 %1480, %v1060_v19  }
  0x96   :  { %v629_v26 = vadd.f32 %v1278_v55, %v561_v59  ;;  %v630_v61 = vadd.f32 %v1279_v56, %v562_v60  ;;  %v1168_v62 = vsel %vm107_vm1, 1.0, %v1622_v36  ;;  %v1169_v63 = vsel %vm108_vm2, 1.0, %v1622_v36 }
  0x97   :  { %v1184_v0 = vsel %vm175_vm3, 1.0, %v1622_v36  ;;  %v1185_v1 = vsel %vm176_vm4, 1.0, %v1622_v36  ;;  %vm243_vm5 = vcmp.eq.s32.totalorder %v87_v57, %v1761_v29  ;;  %vm244_vm6 = vcmp.eq.s32.totalorder %v88_v58, %v1761_v29 }
  0x98   :  { %v639_v2 = vpack.c.bf16 %v630_v61, %v629_v26  ;;  %v223_v27 = vadd.f32 %v1184_v0, %v1168_v62  ;;  %v224_v3 = vadd.f32 %v1185_v1, %v1169_v63  ;;  %v1200_v4 = vsel %vm243_vm5, 1.0, %v1622_v36 }
  0x99   :  { %v1201_v28 = vsel %vm244_vm6, 1.0, %v1622_v36  ;;  %vm311_vm7 = vcmp.eq.s32.totalorder %v87_v57, %v1763_v30  ;;  %vm312_vm8 = vcmp.eq.s32.totalorder %v88_v58, %v1763_v30  ;;  %vm379_vm9 = vcmp.eq.s32.totalorder %v87_v57, %v1765_v31 }
  0x9a   :  { %1391 = vmatprep.subr.bf16.mxu1 %v639_v2  ;;  %v291_v17 = vadd.f32 %v1200_v4, %v223_v27  ;;  %v292_v18 = vadd.f32 %v1201_v28, %v224_v3  ;;  %v1216_v5 = vsel %vm311_vm7, 1.0, %v1622_v36  ;;  %v1217_v29 = vsel %vm312_vm8, 1.0, %v1622_v36  ;;  %1359 = vmatprep.subr.bf16.mxu0 %v639_v2 }
  0x9b   :  { %1392 = vmatpush3.bf16.msra.mxu1 %v639_v2  ;;  %vm380_vm10 = vcmp.eq.s32.totalorder %v88_v58, %v1765_v31  ;;  %v1232_v6 = vsel %vm379_vm9, 1.0, %v1622_v36  ;;  %vm447_vm11 = vcmp.eq.s32.totalorder %v87_v57, %v1767_v32  ;;  %vm448_vm12 = vcmp.eq.s32.totalorder %v88_v58, %v1767_v32  ;;  %1360 = vmatpush3.bf16.msra.mxu0 %v639_v2 }
  0x9c   :  { %v359_v30 = vadd.f32 %v1216_v5, %v291_v17  ;;  %v360_v7 = vadd.f32 %v1217_v29, %v292_v18  ;;  %v1233_v8 = vsel %vm380_vm10, 1.0, %v1622_v36  ;;  %v1248_v9 = vsel %vm447_vm11, 1.0, %v1622_v36 }
  0x9d   :  { %v1249_v10 = vsel %vm448_vm12, 1.0, %v1622_v36  ;;  %vm515_vm13 = vcmp.eq.s32.totalorder %v87_v57, %v1769_v33  ;;  %vm516_vm14 = vcmp.eq.s32.totalorder %v88_v58, %v1769_v33  ;;  %vm583_vm15 = vcmp.eq.s32.totalorder %v87_v57, %v1771_v34 }
  0x9e   :  { %v427_v31 = vadd.f32 %v1232_v6, %v359_v30  ;;  %v428_v14 = vadd.f32 %v1233_v8, %v360_v7  ;;  %v1264_v15 = vsel %vm515_vm13, 1.0, %v1622_v36  ;;  %v1265_v32 = vsel %vm516_vm14, 1.0, %v1622_v36 }
  0x9f   :  { %vm584_vm0 = vcmp.eq.s32.totalorder %v88_v58, %v1771_v34  ;;  %v1280_v21 = vsel %vm583_vm15, 1.0, %v1622_v36  ;;  %v1486_v34 = vld [vmem:[#allocation7 + $0x18] sm:$0xff]   ;;  %vm1624_vm1 = vmmov 0   ;;  %vm975_vm2 = vcmp.lt.s32.totalorder %v1752_v25, 100 }
  0xa0   :  { %v495_v22 = vadd.f32 %v1248_v9, %v427_v31  ;;  %v496_v23 = vadd.f32 %v1249_v10, %v428_v14  ;;  %v1281_v24 = vsel %vm584_vm0, 1.0, %v1622_v36 }
  0xa2   :  { %v563_v35 = vadd.f32 %v1264_v15, %v495_v22  ;;  %v564_v37 = vadd.f32 %v1265_v32, %v496_v23 }
  0xa4   :  { %v631_v38 = vadd.f32 %v1280_v21, %v563_v35  ;;  %v632_v33 = vadd.f32 %v1281_v24, %v564_v37 }
  0xa6   :  { %v640_v39 = vpack.c.bf16 %v632_v33, %v631_v38 }
  0xa8   :  { %1393 = vmatprep.subr.bf16.mxu1 %v640_v39  ;;  %1361 = vmatprep.subr.bf16.mxu0 %v640_v39 }
  0xa9   :  { %1394 = vmatpush3.bf16.msra.mxu1 %v640_v39  ;;  %1362 = vmatpush3.bf16.msra.mxu0 %v640_v39 }
  0xaa   :  { %1446 = vmatprep.subr.bf16.mxu0 %v1623_v51 }
  0xac   :  { %1396 = vmatmul.mubr.bf16.vlgmr.msra.gmra.mrb[0].mxu1 %v1482_v13  ;;  %1364 = vmatmul.mubr.bf16.vlgmr.msra.gmra.mrb[0].mxu0 %v1485_v16 }
  0xad   :  { %1399 = vmatprep.mubr.bf16.mxu1 %v1484_v40  ;;  %1367 = vmatprep.mubr.bf16.mxu0 %v1487_v41 }
  0xb4   :  { %1400 = vmatmul.mubr.bf16.gmra.mrb[4].mxu1 %v1486_v34  ;;  %1368 = vmatmul.mubr.bf16.gmra.mrb[4].mxu0 %v1489_v42 }
  0xb5   :  { %1403 = vmatprep.mubr.bf16.mxu1 %v1488_v43  ;;  %1371 = vmatprep.mubr.bf16.mxu0 %v1491_v44 }
  0xbc   :  { %1404 = vmatmul.mubr.bf16.gmra.mrb[8].mxu1 %v1490_v45  ;;  %1372 = vmatmul.mubr.bf16.gmra.mrb[8].mxu0 %v1493_v46 }
  0xbd   :  { %1407 = vmatprep.mubr.bf16.mxu1 %v1492_v47  ;;  %1375 = vmatprep.mubr.bf16.mxu0 %v1495_v48 }
  0xc4   :  { %1408 = vmatmul.mubr.bf16.gmra.mrb[12].mxu1 %v1494_v49  ;;  %1376 = vmatmul.mubr.bf16.gmra.mrb[12].mxu0 %v1496_v50 }
  0xc5   :  { %1443 = vmatprep.mubr.msk.f32.mxu0 %vm1624_vm1, %v1622_v36 }
 0x17f   :  { %v1397_v20 = vpop.f32.mrb[0].mxu1  ;;  %v1365_v52 = vpop.f32.mrb[0].mxu0 }
 0x180   :  { %1497 = vrcp.f32 %v1397_v20  ;;  %v900_v12 = vpop.f32.mrb[1].mxu1  ;;  %v739_v53 = vpop.f32.mrb[1].mxu0 }
 0x181   :  { %1499 = vrcp.f32 %v900_v12  ;;  %v1398_v54 = vpop.f32.mrb[2].mxu1  ;;  %v1366_v55 = vpop.f32.mrb[2].mxu0 }
 0x182   :  { %1501 = vrcp.f32 %v1398_v54  ;;  %v903_v56 = vpop.f32.mrb[3].mxu1  ;;  %v742_v57 = vpop.f32.mrb[3].mxu0  ;;  %v1059_v54 = vld [vmem:[%s2175_s4] sm:$0x3] }
 0x183   :  { %1503 = vrcp.f32 %v903_v56 }
 0x187   :  { %v1401_v36 = vpop.f32.mrb[4].mxu1  ;;  %v1369_v58 = vpop.f32.mrb[4].mxu0 }
 0x188   :  { %1505 = vrcp.f32 %v1401_v36  ;;  %v916_v59 = vpop.f32.mrb[5].mxu1  ;;  %v755_v60 = vpop.f32.mrb[5].mxu0 }
 0x189   :  { %1507 = vrcp.f32 %v916_v59  ;;  %v1402_v26 = vpop.f32.mrb[6].mxu1  ;;  %v1370_v61 = vpop.f32.mrb[6].mxu0 }
 0x18a   :  { %v1498_v62 = vpop.eup %1497  ;;  %1509 = vrcp.f32 %v1402_v26  ;;  %v919_v63 = vpop.f32.mrb[7].mxu1 }
 0x18b   :  { %v758_v0 = vpop.f32.mrb[7].mxu0  ;;  %v1500_v1 = vpop.eup %1499  ;;  %v1045_v2 = vmul.f32 %v1498_v62, %v1365_v52  ;;  %1511 = vrcp.f32 %v919_v63 }
 0x18c   :  { %v1502_v27 = vpop.eup %1501  ;;  %v1043_v3 = vmul.f32 %v1500_v1, %v739_v53 }
 0x18d   :  { %v1504_v4 = vpop.eup %1503  ;;  %v1046_v28 = vmul.f32 %v1502_v27, %v1366_v55  ;;  %v1064_v55 = vpop.permute.xlu0 %1063 }
 0x18e   :  { %v1044_v17 = vmul.f32 %v1504_v4, %v742_v57 }
 0x18f   :  { %v1450_v18 = vpack.c.bf16 %v1046_v28, %v1045_v2  ;;  %v1405_v5 = vpop.f32.mrb[8].mxu1  ;;  %v1373_v29 = vpop.f32.mrb[8].mxu0 }
 0x190   :  { %v1447_v6 = vpack.c.bf16 %v1044_v17, %v1043_v3  ;;  %1513 = vrcp.f32 %v1405_v5  ;;  %v932_v30 = vpop.f32.mrb[9].mxu1  ;;  %v771_v7 = vpop.f32.mrb[9].mxu0 }
 0x191   :  { %1515 = vrcp.f32 %v932_v30  ;;  %v1406_v8 = vpop.f32.mrb[10].mxu1  ;;  %v1374_v9 = vpop.f32.mrb[10].mxu0 }
 0x192   :  { %v1506_v10 = vpop.eup %1505  ;;  %1517 = vrcp.f32 %v1406_v8  ;;  %v935_v31 = vpop.f32.mrb[11].mxu1  ;;  %1448 = vmatpush3.bf16.msra.mxu0 %v1447_v6 }
 0x193   :  { %v774_v14 = vpop.f32.mrb[11].mxu0  ;;  %v1508_v15 = vpop.eup %1507  ;;  %v1049_v32 = vmul.f32 %v1506_v10, %v1369_v58  ;;  %1519 = vrcp.f32 %v935_v31  ;;  %1449 = vmatprep.subr.bf16.mxu0 %v1623_v51 }
 0x194   :  { %v1510_v22 = vpop.eup %1509  ;;  %v1047_v23 = vmul.f32 %v1508_v15, %v755_v60 }
 0x195   :  { %v1512_v21 = vpop.eup %1511  ;;  %v1050_v24 = vmul.f32 %v1510_v22, %v1370_v61 }
 0x196   :  { %v1048_v35 = vmul.f32 %v1512_v21, %v758_v0  ;;  %1451 = vmatpush3.bf16.msra.mxu0 %v1450_v18 }
 0x197   :  { %v1456_v37 = vpack.c.bf16 %v1050_v24, %v1049_v32  ;;  %v1409_v38 = vpop.f32.mrb[12].mxu1  ;;  %1452 = vmatprep.subr.bf16.mxu0 %v1623_v51  ;;  %v1377_v33 = vpop.f32.mrb[12].mxu0 }
 0x198   :  { %v1453_v39 = vpack.c.bf16 %v1048_v35, %v1047_v23  ;;  %v948_v13 = vpop.f32.mrb[13].mxu1  ;;  %v787_v16 = vpop.f32.mrb[13].mxu0 }
 0x199   :  { %v1023_v40 = vsel %vm975_vm2, %v948_v13, 1.0  ;;  %v1410_v41 = vpop.f32.mrb[14].mxu1  ;;  %v1378_v34 = vpop.f32.mrb[14].mxu0 }
 0x19a   :  { %v1514_v42 = vpop.eup %1513  ;;  %1521 = vrcp.f32 %v1023_v40  ;;  %v951_v43 = vpop.f32.mrb[15].mxu1  ;;  %1454 = vmatpush3.bf16.msra.mxu0 %v1453_v39  ;;  %v1468_v44 = vpack.c.bf16 %v1378_v34, %v1377_v33 }
 0x19b   :  { %v790_v45 = vpop.f32.mrb[15].mxu0  ;;  %v1516_v46 = vpop.eup %1515  ;;  %v1053_v47 = vmul.f32 %v1514_v42, %v1373_v29  ;;  %1455 = vmatprep.subr.bf16.mxu0 %v1623_v51 }
 0x19c   :  { %v1518_v25 = vpop.eup %1517  ;;  %v1051_v48 = vmul.f32 %v1516_v46, %v771_v7 }
 0x19d   :  { %v1520_v49 = vpop.eup %1519  ;;  %v1054_v50 = vmul.f32 %v1518_v25, %v1374_v9 }
 0x19e   :  { %v1052_v19 = vmul.f32 %v1520_v49, %v774_v14  ;;  %1457 = vmatpush3.bf16.msra.mxu0 %v1456_v37 }
 0x19f   :  { %v1462_v11 = vpack.c.bf16 %v1054_v50, %v1053_v47  ;;  %1458 = vmatprep.subr.bf16.mxu0 %v1623_v51 }
 0x1a0   :  { %v1459_v20 = vpack.c.bf16 %v1052_v19, %v1051_v48 }
 0x1a2   :  { %1460 = vmatpush3.bf16.msra.mxu0 %v1459_v20 }
 0x1a3   :  { %1461 = vmatprep.subr.bf16.mxu0 %v1623_v51 }
 0x1a4   :  { %v1522_v52 = vpop.eup %1521 }
 0x1a5   :  { %v1055_v12 = vmul.f32 %v1522_v52, %v787_v16 }
 0x1a6   :  { %1463 = vmatpush3.bf16.msra.mxu0 %v1462_v11 }
 0x1a7   :  { %v1465_v53 = vpack.c.bf16 %v790_v45, %v1055_v12  ;;  %1464 = vmatprep.subr.bf16.mxu0 %v1623_v51 }
 0x1aa   :  { %1466 = vmatpush3.bf16.msra.mxu0 %v1465_v53 }
 0x1ab   :  { %1467 = vmatprep.subr.bf16.mxu0 %v1623_v51 }
 0x1ae   :  { %1469 = vmatpush3.bf16.msra.mxu0 %v1468_v44 }
 0x1b1   :  { %1444 = vmatmul.mubr.f32.vlgmr.msra.gmra.mrb[16].mxu0 %v1059_v54 }
 0x284   :  { %v1132_v56 = vpop.f32.mrb[16].mxu0 }
 0x285   :  { %v1133_v57 = vadd.f32 %v1132_v56, %v1064_v55  ;;  %v1445_v36 = vpop.f32.mrb[17].mxu0 }
 0x287   :  { %1136 = vst [vmem:[#allocation8] sm:$0x3] %v1133_v57 }
 0x288   :  { %1600 = shalt.err (!%p1597_p0)
}
 0x289   :  { %s1601_s4 = scalar_lea.hbm %s2177_s6, 32 }
 0x28a   :  { %p1602_p1 = scmp.ne.s32.totalorder %s2177_s6, %s1601_s4  ;;  %p1605_p2 = scmp.lt.u32.totalorder %s1601_s4, %s2177_s6 }
 0x28c   :  { %p1607_p3 = pnand %p1605_p2, %p1602_p1 }
 0x28e   :  { %1610 = shalt.err (!%p1607_p3)
}
 0x28f   :  { %1146 = dma.vmem_to_hbm [thread:$0]  %s1144_s13, 32, %s2177_s6, [#allocation4]  }
 0x290   :  { %1615 = dma.done.wait [#allocation4], 32  }
 0x291   :  { %1616 = vsyncadd [#allocation4], 4294967264 }
 0x292   :  { %1150 = vsyncpa [#allocation3], 1 }
 0x293   :  { %1151 = vsyncpa [#allocation6], 1 }
 0x294   :  { %1152 = vsyncpa [#allocation4], 1 }

</bundles_post_ra>
